<compile_context>
chip_gen: v7x
topology: tpu7x:2x2x1
jax: 0.10.0
libtpu: 0.0.40
codegen_flags: <defaults>
</compile_context>

<pallas_src>
import functools

import jax
import jax.numpy as jnp
from jax.experimental import pallas as pl
from jax.experimental.pallas import tpu as pltpu


def _round_up(x, m):
    return ((x + m - 1) // m) * m


def _mlp_kernel(x_ref, w1_ref, b1_ref, w2_ref, b2_ref, o_ref, *, compute_dtype):
    # NOTE: the final grid step may be a partial (ragged) block.  Out-of-bounds
    # rows of x_ref hold stale VMEM data; this is safe ONLY because every
    # output row depends on exactly its own input row (no cross-row reduction)
    # and the o_ref writeback DMA is clipped to in-bounds rows.  Do not add
    # row-wise reductions here without masking.
    x = x_ref[...].astype(compute_dtype)  # in-kernel cast: no wrapper HBM pass
    h = jnp.dot(x, w1_ref[...], preferred_element_type=jnp.float32)
    h = jnp.maximum(h + b1_ref[...], 0.0)  # f32 epilogue (v5e has no bf16 VPU)
    o = jnp.dot(h.astype(compute_dtype), w2_ref[...],
                preferred_element_type=jnp.float32)
    o_ref[...] = (o + b2_ref[...]).astype(o_ref.dtype)


def prepare_message_function_params(w1, b1, w2, b2, compute_dtype=jnp.float32):
    """One-time pad/cast of the (tiny) MLP params — call at init, not per step.

    The hidden dim is zero-padded to a multiple of 128 so the intermediate `h`
    is lane-dense and the second matmul gets full MXU slabs.  Padding is exact:
    padded hidden units are relu(0 + 0) = 0 and multiply zero rows of W2.
    Biases stay f32 (f32 epilogue).
    """
    hdim = w1.shape[1]
    h_p = _round_up(hdim, 128)
    w1p = jnp.pad(w1, ((0, 0), (0, h_p - hdim))).astype(compute_dtype)
    b1p = jnp.pad(b1, ((0, 0), (0, h_p - hdim))).astype(jnp.float32)
    w2p = jnp.pad(w2, ((0, h_p - hdim), (0, 0))).astype(compute_dtype)
    b2p = b2.astype(jnp.float32)
    return w1p, b1p, w2p, b2p


@functools.partial(jax.jit, static_argnames=("block_n", "compute_dtype"))
def message_function_forward(x, w1p, b1p, w2p, b2p, *, block_n=1024,
                             compute_dtype=jnp.float32):
    """Pallas MessageFunction.forward for main = Linear -> ReLU -> Linear.

    x:   [N, D_in]   (any dtype; cast to compute_dtype inside the kernel)
    w1p: [D_in, H_p], b1p: [1, H_p]    (prepared via prepare_message_function_params)
    w2p: [H_p, D_out], b2p: [1, D_out]
    returns [N, D_out] in x.dtype.  Matmul inputs are compute_dtype, MXU
    accumulation and bias/ReLU epilogue are f32.
    """
    n, d_in = x.shape
    h_p = w1p.shape[1]
    d_out = w2p.shape[1]
    out_dtype = x.dtype

    # Batch tile: big default (amortizes ~0.35us/step pipeline overhead) but
    # capped so the grid spans >= ~4 steps (megacore sharding on v7x).
    # Multiple of 16 satisfies f32/bf16 sublane tiling.
    bn = max(16, min(block_n, _round_up(pl.cdiv(n, 4), 16)))
    bn = min(bn, _round_up(n, 16))
    grid = (pl.cdiv(n, bn),)  # ragged final block — no row padding, no slice

    x_item = jnp.dtype(x.dtype).itemsize
    o_item = jnp.dtype(out_dtype).itemsize
    w_item = jnp.dtype(compute_dtype).itemsize
    cost = pl.CostEstimate(
        flops=2 * n * (d_in * h_p + h_p * d_out),
        transcendentals=0,
        bytes_accessed=(n * d_in * x_item + n * d_out * o_item
                        + (d_in * h_p + h_p * d_out) * w_item
                        + (h_p + d_out) * 4),
    )

    kernel = functools.partial(_mlp_kernel, compute_dtype=compute_dtype)
    return pl.pallas_call(
        kernel,
        out_shape=jax.ShapeDtypeStruct((n, d_out), out_dtype),
        grid_spec=pltpu.PrefetchScalarGridSpec(
            num_scalar_prefetch=0,
            grid=grid,
            in_specs=[
                pl.BlockSpec((bn, d_in), lambda i: (i, 0)),    # x tile (streamed)
                pl.BlockSpec((d_in, h_p), lambda i: (0, 0)),   # W1 (VMEM resident)
                pl.BlockSpec((1, h_p), lambda i: (0, 0)),      # b1 (resident)
                pl.BlockSpec((h_p, d_out), lambda i: (0, 0)),  # W2 (resident)
                pl.BlockSpec((1, d_out), lambda i: (0, 0)),    # b2 (resident)
            ],
            out_specs=pl.BlockSpec((bn, d_out), lambda i: (i, 0)),
        ),
        compiler_params=pltpu.CompilerParams(
            dimension_semantics=("parallel",)),
        cost_estimate=cost,
    )(x, w1p, b1p, w2p, b2p)


def init_message_function_params(key, d_in, hidden, d_out,
                                 zero_last=False, zero_index=-1,
                                 dtype=jnp.float32):
    """Deterministic init matching nn.Linear's U(-1/sqrt(fan_in), 1/sqrt(fan_in))."""
    k1, k2, k3, k4 = jax.random.split(key, 4)
    lim1 = 1.0 / (d_in ** 0.5)
    lim2 = 1.0 / (hidden ** 0.5)
    w1 = jax.random.uniform(k1, (d_in, hidden), dtype, -lim1, lim1)
    b1 = jax.random.uniform(k2, (1, hidden), dtype, -lim1, lim1)
    w2 = jax.random.uniform(k3, (hidden, d_out), dtype, -lim2, lim2)
    b2 = jax.random.uniform(k4, (1, d_out), dtype, -lim2, lim2)
    if zero_last:
        # MessageFunction.__init__ zeroes main[zero_index].weight / .bias.
        # With main = [Linear, ReLU, Linear], zero_index=-1 is the second Linear.
        if zero_index in (-1, 2):
            w2 = jnp.zeros_like(w2)
            b2 = jnp.zeros_like(b2)
        elif zero_index == 0:
            w1 = jnp.zeros_like(w1)
            b1 = jnp.zeros_like(b1)
    return w1, b1, w2, b2


def _ref_forward(x, w1, b1, w2, b2, compute_dtype=jnp.float32):
    xc, w1c, w2c = (a.astype(compute_dtype) for a in (x, w1, w2))
    h = jnp.maximum(
        jnp.dot(xc, w1c, preferred_element_type=jnp.float32) + b1, 0.0)
    o = jnp.dot(h.astype(compute_dtype), w2c,
                preferred_element_type=jnp.float32) + b2
    return o.astype(x.dtype)


# TODO(synk): `main` can be an arbitrary nn.Sequential; only the canonical
# Linear -> ReLU -> Linear message MLP is fused here.

if __name__ == "__main__":
    key = jax.random.PRNGKey(0)
    kx, kp = jax.random.split(key)

    # Small shapes; N intentionally NOT a multiple of the tile size to
    # exercise the ragged-final-block path.
    N, D_IN, HIDDEN, D_OUT = 200, 32, 64, 32
    x = jax.random.normal(kx, (N, D_IN), dtype=jnp.float32)
    w1, b1, w2, b2 = init_message_function_params(
        kp, D_IN, HIDDEN, D_OUT, zero_last=False)

    # f32 path (strict tolerance)
    params_f32 = prepare_message_function_params(
        w1, b1, w2, b2, compute_dtype=jnp.float32)
    out = jax.block_until_ready(message_function_forward(x, *params_f32))
    ref = _ref_forward(x, w1, b1, w2, b2)
    assert out.shape == (N, D_OUT)
    assert jnp.allclose(out, ref, atol=1e-4, rtol=1e-4), "f32 mismatch vs ref"

    # bf16 matmul path (f32 accumulation + f32 epilogue), looser tolerance
    params_bf16 = prepare_message_function_params(
        w1, b1, w2, b2, compute_dtype=jnp.bfloat16)
    out_bf16 = jax.block_until_ready(
        message_function_forward(x, *params_bf16,
                                 compute_dtype=jnp.bfloat16))
    ref_bf16 = _ref_forward(x, w1, b1, w2, b2, compute_dtype=jnp.bfloat16)
    assert jnp.allclose(out_bf16, ref_bf16, atol=2e-2, rtol=2e-2), \
        "bf16 mismatch vs ref"

    # zero_last=True branch (output must be exactly zero)
    w1z, b1z, w2z, b2z = init_message_function_params(
        kp, D_IN, HIDDEN, D_OUT, zero_last=True, zero_index=-1)
    params_z = prepare_message_function_params(w1z, b1z, w2z, b2z)
    out_z = jax.block_until_ready(message_function_forward(x, *params_z))
    assert jnp.allclose(out_z, 0.0), "zero_last output should be all zeros"

    print("KERNEL_OK")
</pallas_src>

<mosaic_0001>
module attributes {stable_mosaic.version = 11 : i64} {
  func.func @_mlp_kernel(%arg0: i32, %arg1: memref<64x32xf32, #tpu.memory_space<vmem>>, %arg2: memref<32x128xf32, #tpu.memory_space<vmem>>, %arg3: memref<1x128xf32, #tpu.memory_space<vmem>>, %arg4: memref<128x32xf32, #tpu.memory_space<vmem>>, %arg5: memref<1x32xf32, #tpu.memory_space<vmem>>, %arg6: memref<64x32xf32, #tpu.memory_space<vmem>>) attributes {dimension_semantics = [#tpu.dimension_semantics<parallel>], iteration_bounds = array<i64: 4>, scalar_prefetch = 0 : i64, scratch_operands = 0 : i64, tpu.core_type = #tpu.core_type<tc>, window_params = [{transform_indices = @transform_0, window_bounds = array<i64: 64, 32>}, {pipeline_mode = #tpu.pipeline_mode<synchronous>, transform_indices = @transform_1, window_bounds = array<i64: 32, 128>}, {pipeline_mode = #tpu.pipeline_mode<synchronous>, transform_indices = @transform_2, window_bounds = array<i64: 1, 128>}, {pipeline_mode = #tpu.pipeline_mode<synchronous>, transform_indices = @transform_3, window_bounds = array<i64: 128, 32>}, {pipeline_mode = #tpu.pipeline_mode<synchronous>, transform_indices = @transform_4, window_bounds = array<i64: 1, 32>}, {transform_indices = @transform_5, window_bounds = array<i64: 64, 32>}]} {
    %c0 = arith.constant 0 : index
    %c0_0 = arith.constant 0 : index
    %0 = vector.load %arg1[%c0, %c0_0] : memref<64x32xf32, #tpu.memory_space<vmem>>, vector<64x32xf32>
    %c0_1 = arith.constant 0 : index
    %c0_2 = arith.constant 0 : index
    %1 = vector.load %arg2[%c0_1, %c0_2] : memref<32x128xf32, #tpu.memory_space<vmem>>, vector<32x128xf32>
    %cst = arith.constant dense<0.000000e+00> : vector<64x128xf32>
    %2 = tpu.matmul %0, %1, %cst {dimension_numbers = #tpu.dot_dimension_numbers<[1], [0], [0], [1], [0, 0, 1, 1], [], []>} : vector<64x32xf32>, vector<32x128xf32>, vector<64x128xf32> -> vector<64x128xf32>
    %c0_3 = arith.constant 0 : index
    %c0_4 = arith.constant 0 : index
    %3 = vector.load %arg3[%c0_3, %c0_4] : memref<1x128xf32, #tpu.memory_space<vmem>>, vector<1x128xf32>
    %4 = vector.broadcast %3 : vector<1x128xf32> to vector<64x128xf32>
    %5 = arith.addf %2, %4 : vector<64x128xf32>
    %cst_5 = arith.constant 0.000000e+00 : f32
    %6 = vector.broadcast %cst_5 : f32 to vector<64x128xf32>
    %7 = arith.maximumf %5, %6 : vector<64x128xf32>
    %c0_6 = arith.constant 0 : index
    %c0_7 = arith.constant 0 : index
    %8 = vector.load %arg4[%c0_6, %c0_7] : memref<128x32xf32, #tpu.memory_space<vmem>>, vector<128x32xf32>
    %cst_8 = arith.constant dense<0.000000e+00> : vector<64x32xf32>
    %9 = tpu.matmul %7, %8, %cst_8 {dimension_numbers = #tpu.dot_dimension_numbers<[1], [0], [0], [1], [0, 0, 1, 1], [], []>} : vector<64x128xf32>, vector<128x32xf32>, vector<64x32xf32> -> vector<64x32xf32>
    %c0_9 = arith.constant 0 : index
    %c0_10 = arith.constant 0 : index
    %10 = vector.load %arg5[%c0_9, %c0_10] : memref<1x32xf32, #tpu.memory_space<vmem>>, vector<1x32xf32>
    %11 = vector.broadcast %10 : vector<1x32xf32> to vector<64x32xf32>
    %12 = arith.addf %9, %11 : vector<64x32xf32>
    %c0_11 = arith.constant 0 : index
    %c0_12 = arith.constant 0 : index
    %13 = vector.load %arg6[%c0_11, %c0_12] : memref<64x32xf32, #tpu.memory_space<vmem>>, vector<64x32xf32>
    tpu.vector_store %arg6[%c0_11, %c0_12], %12 {strides = array<i32>} : memref<64x32xf32, #tpu.memory_space<vmem>>, vector<64x32xf32>,
    return
  }
  func.func @transform_0(%arg0: i32) -> (i32, i32) {
    %c0_i32 = arith.constant 0 : i32
    %c0_i32_0 = arith.constant 0 : i32
    return %arg0, %c0_i32 : i32, i32
  }
  func.func @transform_1(%arg0: i32) -> (i32, i32) {
    %c0_i32 = arith.constant 0 : i32
    %c0_i32_0 = arith.constant 0 : i32
    %c0_i32_1 = arith.constant 0 : i32
    return %c0_i32, %c0_i32_0 : i32, i32
  }
  func.func @transform_2(%arg0: i32) -> (i32, i32) {
    %c0_i32 = arith.constant 0 : i32
    %c0_i32_0 = arith.constant 0 : i32
    %c0_i32_1 = arith.constant 0 : i32
    return %c0_i32, %c0_i32_0 : i32, i32
  }
  func.func @transform_3(%arg0: i32) -> (i32, i32) {
    %c0_i32 = arith.constant 0 : i32
    %c0_i32_0 = arith.constant 0 : i32
    %c0_i32_1 = arith.constant 0 : i32
    return %c0_i32, %c0_i32_0 : i32, i32
  }
  func.func @transform_4(%arg0: i32) -> (i32, i32) {
    %c0_i32 = arith.constant 0 : i32
    %c0_i32_0 = arith.constant 0 : i32
    %c0_i32_1 = arith.constant 0 : i32
    return %c0_i32, %c0_i32_0 : i32, i32
  }
  func.func @transform_5(%arg0: i32) -> (i32, i32) {
    %c0_i32 = arith.constant 0 : i32
    %c0_i32_0 = arith.constant 0 : i32
    return %arg0, %c0_i32 : i32, i32
  }
}

</mosaic_0001>

<bundles_post_ra>
// kernel: message_function_forward.1
= control target key start
LH: loop header
LB: loop body
LE: loop exit
PB: predicated region body
PF: predicated region fallthrough
CT: control target
= control target key end

     0   :  { %s1181_s18 = smov 0   ;;  %s1183_s19 = smov 0   ;;  %s1382_s0 = inlined_call_operand.vmem [shape: f32[200,32], index: 0, kind: input, shape index: {}]   ;;  %s1383_s1 = inlined_call_operand.vmem [shape: f32[32,128], index: 1, kind: input, shape index: {}]   ;;  %s1384_s2 = inlined_call_operand.vmem [shape: f32[1,128], index: 2, kind: input, shape index: {}]   ;;  %s1385_s3 = inlined_call_operand.vmem [shape: f32[128,32], index: 3, kind: input, shape index: {}]   ;;  %s1386_s4 = inlined_call_operand.vmem [shape: f32[1,32], index: 4, kind: input, shape index: {}]   ;;  %s1387_s5 = inlined_call_operand.vmem [shape: f32[200,32], index: 5, kind: output, shape index: {}]  }
   0x1   :  { %s1185_s20 = smov 0  }
   0x2 LB: > { %s1194_s21 = sadd.s32 4294967295, %s1117_s20   ;;  %s1196_s22 = sadd.s32 1, %s1117_s20   ;;  %s1117_s20 = sphi %s1185_s20, %s1394_s20   ;;  %s1113_s19 = sphi %s1183_s19, %s1393_s19   ;;  %s1109_s18 = sphi %s1181_s18, %s1392_s18  }
   0x3   : > { %s129_s23 = ssub.s32 %s1117_s20, %s1196_s22  ;;  %s132_s24 = sadd.s32 1, %s1113_s19 }
   0x4   : > { %p130_p0 = scmp.eq.s32.totalorder %s129_s23, 0  ;;  %p142_p1 = scmp.ne.s32.totalorder %s1113_s19, %s1109_s18 }
   0x5   : > { %p143_p2 = scmp.eq.s32.totalorder %s1194_s21, 3  ;;  %p785_p3 = scmp.ge.s32.totalorder %s1117_s20, 1 }
   0x6   : > { %s1204_s25 = scalar_select %p130_p0, %s1113_s19, %s132_s24  }
   0x7   : > { %p1206_p4 = por %p143_p2, %p142_p1  ;;  %p196_p5 = scmp.lt.s32.totalorder %s1117_s20, 5 }
   0x9   : > { %p197_p6 = pnand %p785_p3, %p196_p5 }
   0xa   : > { %v254_v0 = vld [vmem:[%s1383_s1] sm:$0xff] (!%p197_p6)  ;;  %v255_v1 = vld [vmem:[%s1383_s1 + $0x8] sm:$0xff] (!%p197_p6)  ;;  %v256_v2 = vld [vmem:[%s1383_s1 + $0x10] sm:$0xff] (!%p197_p6)  ;;  %s1220_s8 = sshll.u32 (!%p197_p6), %s1194_s21, 3  ;;  %vm265_vm0 = vcmask (!%p197_p6), 261120   ;;  %s224_s14 = sand.u32 (!%p197_p6), 1, %s1109_s18  }
   0xb   : > { %200 = sbr.rel (%p197_p6) target bundleno = 519 (0x207), region = 40  ;;  %v919_v3 = vpack.c.bf16 (!%p197_p6), %v255_v1, %v254_v0  ;;  %v257_v4 = vld [vmem:[%s1383_s1 + $0x18] sm:$0xff] (!%p197_p6)  ;;  %p232_p7 = scmp.lt.s32.totalorder (!%p197_p6), %s1220_s8, 24  ;;  %v403_v5 = vld [vmem:[%s1385_s3] sm:$0xff] (!%p197_p6)  ;;  %v404_v6 = vld [vmem:[%s1385_s3 + $0x8] sm:$0xff] (!%p197_p6) }
   0xc   : > { %v923_v7 = vpack.c.bf16 (!%p197_p6), %v257_v4, %v256_v2  ;;  %v927_v8 = vpack.c.bf16 (!%p197_p6), %v404_v6, %v403_v5  ;;  %v405_v9 = vld [vmem:[%s1385_s3 + $0x10] sm:$0xff] (!%p197_p6)  ;;  %v406_v10 = vld [vmem:[%s1385_s3 + $0x18] sm:$0xff] (!%p197_p6)  ;;  %v407_v12 = vld [vmem:[%s1385_s3 + $0x20] sm:$0xff] (!%p197_p6)  ;;  %s786_s15 = sshll.u32 (!%p197_p6), %s224_s14, 6 }
   0xd   : > { %920 = vmatprep.subr.bf16.mxu0 (!%p197_p6), %v919_v3  ;;  %v931_v11 = vpack.c.bf16 (!%p197_p6), %v406_v10, %v405_v9  ;;  %v408_v13 = vld [vmem:[%s1385_s3 + $0x28] sm:$0xff] (!%p197_p6)  ;;  %v409_v18 = vld [vmem:[%s1385_s3 + $0x30] sm:$0xff] (!%p197_p6)  ;;  %v410_v19 = vld [vmem:[%s1385_s3 + $0x38] sm:$0xff] (!%p197_p6)  ;;  %s1303_s20 = scalar_lea.vmem (!%p197_p6), [#allocation2], %s786_s15  }
   0xe   : > { %922 = vmatpush3.bf16.msra.mxu0 (!%p197_p6), %v919_v3  ;;  %959 = vmatprep.subr.bf16.mxu1 (!%p197_p6), %v927_v8  ;;  %v935_v16 = vpack.c.bf16 (!%p197_p6), %v408_v13, %v407_v12  ;;  %v939_v21 = vpack.c.bf16 (!%p197_p6), %v410_v19, %v409_v18  ;;  %v411_v23 = vld [vmem:[%s1385_s3 + $0x40] sm:$0xff] (!%p197_p6)  ;;  %v412_v24 = vld [vmem:[%s1385_s3 + $0x48] sm:$0xff] (!%p197_p6)  ;;  %v413_v28 = vld [vmem:[%s1385_s3 + $0x50] sm:$0xff] (!%p197_p6) }
   0xf   : > { %924 = vmatprep.subr.bf16.mxu0 (!%p197_p6), %v923_v7  ;;  %967 = vmatpush3.bf16.msra.mxu1 (!%p197_p6), %v927_v8  ;;  %v943_v26 = vpack.c.bf16 (!%p197_p6), %v412_v24, %v411_v23  ;;  %v414_v29 = vld [vmem:[%s1385_s3 + $0x58] sm:$0xff] (!%p197_p6)  ;;  %v415_v32 = vld [vmem:[%s1385_s3 + $0x60] sm:$0xff] (!%p197_p6)  ;;  %v416_v33 = vld [vmem:[%s1385_s3 + $0x68] sm:$0xff] (!%p197_p6) }
  0x10   : > { %960 = vmatprep.subr.bf16.mxu1 (!%p197_p6), %v931_v11  ;;  %v947_v31 = vpack.c.bf16 (!%p197_p6), %v414_v29, %v413_v28  ;;  %v951_v34 = vpack.c.bf16 (!%p197_p6), %v416_v33, %v415_v32  ;;  %v417_v35 = vld [vmem:[%s1385_s3 + $0x70] sm:$0xff] (!%p197_p6)  ;;  %v418_v36 = vld [vmem:[%s1385_s3 + $0x78] sm:$0xff] (!%p197_p6)  ;;  %v789_v38 = vld [vmem:[%s1384_s2] ss:$0 sm:$0xff] (!%p197_p6) }
  0x11   : > { %v955_v37 = vpack.c.bf16 (!%p197_p6), %v418_v36, %v417_v35  ;;  %v798_v63 = vld [vmem:[%s1386_s4] ss:$0 sm:$0xff] (!%p197_p6) }
  0x12   : > { %s233_s23 = scalar_select %p232_p7, %s1220_s8, 24  ;;  %926 = vmatpush3.bf16.msra.mxu0 %v923_v7 }
  0x13   : > { %928 = vmatprep.subr.bf16.mxu0 %v927_v8  ;;  %968 = vmatpush3.bf16.msra.mxu1 %v931_v11  ;;  %s547_s18 = ssub.s32 (%p1206_p4), 25, %s1220_s8 }
  0x14   : > { %s788_s24 = sshll.u32 %s233_s23, 3  ;;  %961 = vmatprep.subr.bf16.mxu1 %v935_v16  ;;  %s816_s23 = sshll.u32 (%p1206_p4), %s1194_s21, 6 }
  0x15   : > { %s1248_s9 = scalar_lea.vmem %s1382_s0, %s788_s24  ;;  %p548_p8 = scmp.lt.s32.totalorder (%p1206_p4), %s547_s18, 8 }
  0x16   : > { %v246_v14 = vld [vmem:[%s1248_s9] sm:$0xff]  ;;  %v247_v15 = vld [vmem:[%s1248_s9 + $0x8] sm:$0xff]  ;;  %v248_v17 = vld [vmem:[%s1248_s9 + $0x10] sm:$0xff]  ;;  %s1328_s28 = scalar_lea.vmem (%p1206_p4), %s1387_s5, %s816_s23  }
  0x17   : > { %863 = vmatprep.mubr.msk.f32.mxu0 %vm265_vm0, %v246_v14  ;;  %v249_v20 = vld [vmem:[%s1248_s9 + $0x18] sm:$0xff]  ;;  %v250_v22 = vld [vmem:[%s1248_s9 + $0x20] sm:$0xff]  ;;  %969 = vmatpush3.bf16.msra.mxu1 %v935_v16  ;;  %v251_v25 = vld [vmem:[%s1248_s9 + $0x28] sm:$0xff] }
  0x18   : > { %864 = vmatmul.mubr.msk.f32.vlgmr.msra.gmra.mrb[0].mxu0 %vm265_vm0, %v247_v15  ;;  %962 = vmatprep.subr.bf16.mxu1 %v939_v21  ;;  %v252_v27 = vld [vmem:[%s1248_s9 + $0x30] sm:$0xff]  ;;  %v253_v30 = vld [vmem:[%s1248_s9 + $0x38] sm:$0xff] }
  0x19   : > { %866 = vmatprep.mubr.msk.f32.mxu0 %vm265_vm0, %v248_v17  ;;  %930 = vmatpush3.bf16.msra.mxu0 %v927_v8 }
  0x1a   : > { %932 = vmatprep.subr.bf16.mxu0 %v931_v11 }
  0x1b   : > { %970 = vmatpush3.bf16.msra.mxu1 %v939_v21 }
  0x1c   : > { %867 = vmatmul.mubr.msk.f32.gmra.mrb[2].mxu0 %vm265_vm0, %v249_v20  ;;  %963 = vmatprep.subr.bf16.mxu1 %v943_v26 }
  0x1d   : > { %869 = vmatprep.mubr.msk.f32.mxu0 %vm265_vm0, %v250_v22  ;;  %934 = vmatpush3.bf16.msra.mxu0 %v931_v11 }
  0x1e   : > { %936 = vmatprep.subr.bf16.mxu0 %v935_v16 }
  0x1f   : > { %971 = vmatpush3.bf16.msra.mxu1 %v943_v26 }
  0x20   : > { %870 = vmatmul.mubr.msk.f32.gmra.mrb[4].mxu0 %vm265_vm0, %v251_v25  ;;  %964 = vmatprep.subr.bf16.mxu1 %v947_v31 }
  0x21   : > { %872 = vmatprep.mubr.msk.f32.mxu0 %vm265_vm0, %v252_v27  ;;  %938 = vmatpush3.bf16.msra.mxu0 %v935_v16 }
  0x22   : > { %940 = vmatprep.subr.bf16.mxu0 %v939_v21 }
  0x23   : > { %972 = vmatpush3.bf16.msra.mxu1 %v947_v31 }
  0x24   : > { %873 = vmatmul.mubr.msk.f32.gmra.mrb[6].mxu0 %vm265_vm0, %v253_v30  ;;  %965 = vmatprep.subr.bf16.mxu1 %v951_v34 }
  0x25   : > { %942 = vmatpush3.bf16.msra.mxu0 %v939_v21 }
  0x26   : > { %944 = vmatprep.subr.bf16.mxu0 %v943_v26 }
  0x27   : > { %973 = vmatpush3.bf16.msra.mxu1 %v951_v34 }
  0x28   : > { %966 = vmatprep.subr.bf16.mxu1 %v955_v37 }
  0x29   : > { %946 = vmatpush3.bf16.msra.mxu0 %v943_v26 }
  0x2a   : > { %948 = vmatprep.subr.bf16.mxu0 %v947_v31 }
  0x2b   : > { %974 = vmatpush3.bf16.msra.mxu1 %v955_v37 }
  0x2d   : > { %950 = vmatpush3.bf16.msra.mxu0 %v947_v31 }
  0x2e   : > { %952 = vmatprep.subr.bf16.mxu0 %v951_v34 }
  0x31   : > { %954 = vmatpush3.bf16.msra.mxu0 %v951_v34 }
  0x32   : > { %956 = vmatprep.subr.bf16.mxu0 %v955_v37 }
  0x35   : > { %958 = vmatpush3.bf16.msra.mxu0 %v955_v37 }
  0xeb   : > { %v865_v39 = vpop.f32.mrb[0].mxu0 }
  0xec   : > { %v362_v40 = vadd.f32 %v865_v39, %v789_v38  ;;  %v356_v41 = vpop.f32.mrb[1].mxu0 }
  0xed   : > { %v357_v42 = vadd.f32 %v789_v38, %v356_v41 }
  0xee   : > { %v396_v45 = vmax.f32 %v362_v40, 0.0 }
  0xef   : > { %v395_v43 = vmax.f32 %v357_v42, 0.0  ;;  %v868_v44 = vpop.f32.mrb[2].mxu0 }
  0xf0   : > { %v372_v46 = vadd.f32 %v868_v44, %v789_v38  ;;  %v366_v47 = vpop.f32.mrb[3].mxu0 }
  0xf1   : > { %907 = vmatprep.mubr.f32.mxu0 %v395_v43  ;;  %v367_v48 = vadd.f32 %v789_v38, %v366_v47 }
  0xf2   : > { %908 = vmatmul.mubr.f32.vlgmr.msra.gmra.mrb[8].mxu0 %v396_v45  ;;  %v398_v51 = vmax.f32 %v372_v46, 0.0 }
  0xf3   : > { %v871_v49 = vpop.f32.mrb[4].mxu0  ;;  %v397_v50 = vmax.f32 %v367_v48, 0.0 }
  0xf4   : > { %v382_v52 = vadd.f32 %v871_v49, %v789_v38  ;;  %v376_v53 = vpop.f32.mrb[5].mxu0 }
  0xf5   : > { %v377_v54 = vadd.f32 %v789_v38, %v376_v53  ;;  %910 = vmatprep.mubr.f32.mxu1 %v397_v50 }
  0xf6   : > { %911 = vmatmul.mubr.f32.vlgmr.msra.gmra.mrb[0].mxu1 %v398_v51  ;;  %v400_v57 = vmax.f32 %v382_v52, 0.0 }
  0xf7   : > { %v399_v55 = vmax.f32 %v377_v54, 0.0  ;;  %v874_v56 = vpop.f32.mrb[6].mxu0 }
  0xf8   : > { %v392_v58 = vadd.f32 %v874_v56, %v789_v38  ;;  %v386_v59 = vpop.f32.mrb[7].mxu0 }
  0xf9   : > { %v387_v60 = vadd.f32 %v789_v38, %v386_v59  ;;  %913 = vmatprep.mubr.f32.mxu1 %v399_v55 }
  0xfa   : > { %914 = vmatmul.mubr.f32.gmra.mrb[2].mxu1 %v400_v57  ;;  %v402_v62 = vmax.f32 %v392_v58, 0.0 }
  0xfb   : > { %v401_v61 = vmax.f32 %v387_v60, 0.0 }
  0xfd   : > { %916 = vmatprep.mubr.f32.mxu1 %v401_v61 }
  0xfe   : > { %917 = vmatmul.mubr.f32.gmra.mrb[4].mxu1 %v402_v62 }
 0x1c5   : > { %v909_v0 = vpop.f32.mrb[8].mxu0 }
 0x1c6   : > { %v498_v1 = vadd.f32 %v909_v0, %v798_v63  ;;  %v492_v2 = vpop.f32.mrb[9].mxu0 }
 0x1c7   : > { %v493_v3 = vadd.f32 %v798_v63, %v492_v2 }
 0x1c8   : > { %532 = vst.msk [vmem:[%s1303_s20 + $0x8] sm:$0xff] %vm265_vm0, %v498_v1 }
 0x1c9   : > { %531 = vst.msk [vmem:[%s1303_s20] sm:$0xff] %vm265_vm0, %v493_v3  ;;  %v912_v4 = vpop.f32.mrb[0].mxu1 }
 0x1ca   : > { %v508_v5 = vadd.f32 %v912_v4, %v798_v63  ;;  %v502_v6 = vpop.f32.mrb[1].mxu1 }
 0x1cb   : > { %v503_v7 = vadd.f32 %v798_v63, %v502_v6 }
 0x1cc   : > { %534 = vst.msk [vmem:[%s1303_s20 + $0x18] sm:$0xff] %vm265_vm0, %v508_v5 }
 0x1cd   : > { %533 = vst.msk [vmem:[%s1303_s20 + $0x10] sm:$0xff] %vm265_vm0, %v503_v7  ;;  %v915_v8 = vpop.f32.mrb[2].mxu1 }
 0x1ce   : > { %v518_v9 = vadd.f32 %v915_v8, %v798_v63  ;;  %v512_v10 = vpop.f32.mrb[3].mxu1 }
 0x1cf   : > { %v513_v11 = vadd.f32 %v798_v63, %v512_v10  ;;  %545 = sbr.rel (!%p1206_p4) target bundleno = 519 (0x207), region = 44 }
 0x1d0   : > { %536 = vst.msk [vmem:[%s1303_s20 + $0x28] sm:$0xff] %vm265_vm0, %v518_v9 }
 0x1d1   : > { %535 = vst.msk [vmem:[%s1303_s20 + $0x20] sm:$0xff] %vm265_vm0, %v513_v11  ;;  %v918_v12 = vpop.f32.mrb[4].mxu1 }
 0x1d2   : > { %v528_v13 = vadd.f32 %v918_v12, %v798_v63  ;;  %v522_v14 = vpop.f32.mrb[5].mxu1 }
 0x1d3   : > { %v523_v15 = vadd.f32 %v798_v63, %v522_v14 }
 0x1d4   : > { %538 = vst.msk [vmem:[%s1303_s20 + $0x38] sm:$0xff] %vm265_vm0, %v528_v13 }
 0x1d5   : > { %537 = vst.msk [vmem:[%s1303_s20 + $0x30] sm:$0xff] %vm265_vm0, %v523_v15 }
 0x1d6   : > { %s1396_s18 = smov (!%p548_p8, %s547_s18), 8 }
 0x1d7   : > { %s801_s29 = sshll.u32 %s1396_s18, 7 }
 0x1d8   : > { %p804_p9 = scmp.eq.s32.totalorder %s801_s29, 0 }
 0x1d9   : > { %s1334_s30 = sshrl.u32 (!%p804_p9), %s1396_s18, 3 }
 0x1da   : > { %556 = sbr.rel (%p804_p9) target bundleno = 519 (0x207), region = 48  ;;  %p805_p10 = scmp.le.s32.totalorder (!%p804_p9), %s1334_s30, 0 }
 0x1e1   : > { %738 = sbr.rel (%p805_p10) target bundleno = 498 (0x1f2), region = 124  ;;  %s1389_s21 = smov (!%p805_p10), %s1328_s28 }
 0x1e2   : > { %s1390_s26 = smov (!%p805_p10), %s1303_s20  ;;  %s1343_s8 = smov (!%p805_p10), 0  }
 0x1e3   : > { %s1345_s6 = smov (!%p805_p10), 0  }
 0x1e8 LB: >> { %v632_v16 = vld [vmem:[%s1125_s26] sm:$0xff]  ;;  %v634_v17 = vld [vmem:[%s1125_s26 + $0x8] sm:$0xff]  ;;  %v636_v18 = vld [vmem:[%s1125_s26 + $0x10] sm:$0xff]  ;;  %s648_s7 = sadd.s32 1, %s1129_s8  ;;  %s626_s6 = sadd.s32 1, %s1133_s6   ;;  %s1133_s6 = sphi %s1345_s6, %s626_s6   ;;  %s1129_s8 = sphi %s1343_s8, %s1391_s8   ;;  %s1125_s26 = sphi %s1390_s26, %s653_s26   ;;  %s1121_s21 = sphi %s1389_s21, %s654_s21  }
 0x1e9   : >> { %633 = vst [vmem:[%s1121_s21] sm:$0xff] %v632_v16  ;;  %635 = vst [vmem:[%s1121_s21 + $0x8] sm:$0xff] %v634_v17  ;;  %v638_v19 = vld [vmem:[%s1125_s26 + $0x18] sm:$0xff]  ;;  %v640_v20 = vld [vmem:[%s1125_s26 + $0x20] sm:$0xff]  ;;  %p649_p11 = scmp.ge.s32.totalorder %s648_s7, %s1334_s30  ;;  %p625_p12 = scmp.ge.s32.totalorder %s626_s6, %s1334_s30 }
 0x1ea   : >> { %637 = vst [vmem:[%s1121_s21 + $0x10] sm:$0xff] %v636_v18  ;;  %v642_v21 = vld [vmem:[%s1125_s26 + $0x28] sm:$0xff]  ;;  %639 = vst [vmem:[%s1121_s21 + $0x18] sm:$0xff] %v638_v19  ;;  %v644_v22 = vld [vmem:[%s1125_s26 + $0x30] sm:$0xff] }
 0x1eb   : >> { %641 = vst [vmem:[%s1121_s21 + $0x20] sm:$0xff] %v640_v20  ;;  %643 = vst [vmem:[%s1121_s21 + $0x28] sm:$0xff] %v642_v21  ;;  %v646_v23 = vld [vmem:[%s1125_s26 + $0x38] sm:$0xff]  ;;  %s1398_s7 = smov (%p649_p11, %s648_s7), 0  ;;  %628 = sbr.rel (!%p625_p12) target bundleno = 488 (0x1e8), region = 130 }
 0x1ec   : >> { %645 = vst [vmem:[%s1121_s21 + $0x30] sm:$0xff] %v644_v22  ;;  %647 = vst [vmem:[%s1121_s21 + $0x38] sm:$0xff] %v646_v23  ;;  %s806_s9 = sshll.u32 %s1398_s7, 6  ;;  %s1391_s8 = smov %s1398_s7 }
 0x1ed   : >> { %s653_s26 = scalar_lea.vmem %s1303_s20, %s806_s9 [#allocation2]   ;;  %s654_s21 = scalar_lea.vmem %s1328_s28, %s806_s9  }
 0x1f2 PF: > { %s1364_s10 = sand.u32 7, %s1396_s18   ;;  %s817_s11 = sshll.u32 %s1334_s30, 6 }
 0x1f3   : > { %s659_s12 = scalar_lea.vmem %s1303_s20, %s817_s11 [#allocation2]   ;;  %s661_s13 = scalar_lea.vmem %s1328_s28, %s817_s11  }
 0x1f4   : > { %p811_p13 = scmp.le.s32.totalorder %s1364_s10, 0 }
 0x1f5   : > { %s1135_s14 = smov (!%p811_p13), %s661_s13   ;;  %s1139_s15 = smov (!%p811_p13), %s659_s12  }
 0x1f6   : > { %752 = sbr.rel (%p811_p13) target bundleno = 519 (0x207), region = 135  ;;  %s1143_s16 = smov (!%p811_p13), 0  }
 0x1f7   : > { %s1147_s17 = smov (!%p811_p13), 0  }
 0x1fd LB: >> { %v671_v24 = vld [vmem:[%s1141_s15] sm:$0xff]  ;;  %s673_s18 = sadd.s32 1, %s1145_s16  ;;  %s665_s17 = sadd.s32 1, %s1149_s17   ;;  %s1149_s17 = sphi %s1147_s17, %s665_s17   ;;  %s1145_s16 = sphi %s1143_s16, %s1144_s16   ;;  %s1141_s15 = sphi %s1139_s15, %s678_s15   ;;  %s1137_s14 = sphi %s1135_s14, %s679_s14  }
 0x1fe   : >> { %672 = vst [vmem:[%s1137_s14] sm:$0xff] %v671_v24  ;;  %p674_p0 = scmp.ge.s32.totalorder %s673_s18, %s1364_s10  ;;  %p664_p1 = scmp.ge.s32.totalorder %s665_s17, %s1364_s10 }
 0x200   : >> { %s1400_s18 = smov (%p674_p0, %s673_s18), 0  ;;  %667 = sbr.rel (!%p664_p1) target bundleno = 509 (0x1fd), region = 141 }
 0x201   : >> { %s812_s20 = sshll.u32 %s1400_s18, 3  ;;  %s1144_s16 = smov %s1400_s18  }
 0x202   : >> { %s678_s15 = scalar_lea.vmem %s659_s12, %s812_s20 [#allocation2]   ;;  %s679_s14 = scalar_lea.vmem %s661_s13, %s812_s20  }
 0x207 PF: > { %p12_p2 = scmp.ge.s32.totalorder %s1196_s22, 6   ;;  %s1392_s18 = smov %s1113_s19 }
 0x208   : > { %s1393_s19 = smov %s1204_s25  ;;  %s1394_s20 = smov %s1196_s22 }
 0x209   :  { %14 = sbr.rel (!%p12_p2) target bundleno = 2 (0x2), region = 152 }

</bundles_post_ra>
